<compile_context>
chip_gen: v7x
topology: tpu7x:2x2x1
jax: 0.10.0
libtpu: 0.0.40
codegen_flags: <defaults>
</compile_context>

<pallas_src>
import functools

import jax
import jax.numpy as jnp
from jax import lax
from jax.experimental import pallas as pl
from jax.experimental.pallas import tpu as pltpu


def _round_up(x, m):
    return ((x + m - 1) // m) * m


_CONTRACT_ROWS = (((0,), (0,)), ((), ()))   # contract over the batch axis


def _barlow_twins_kernel(h1_ref, h2_ref, out_ref,
                         s_acc, s1_acc, q1_acc, s2_acc, q2_acc, d_acc,
                         *, lambda_coeff, batch_size, tile_n, needs_mask):
    step = pl.program_id(0)

    @pl.when(step == 0)
    def _init():
        s_acc[...] = jnp.zeros_like(s_acc)
        s1_acc[...] = jnp.zeros_like(s1_acc)
        q1_acc[...] = jnp.zeros_like(q1_acc)
        s2_acc[...] = jnp.zeros_like(s2_acc)
        q2_acc[...] = jnp.zeros_like(q2_acc)
        d_acc[...] = jnp.zeros_like(d_acc)

    a = h1_ref[...]          # (tn, D), native dtype -> MXU directly
    b = h2_ref[...]

    if needs_mask:
        # Batch tail handled in-kernel (no wrapper jnp.pad HBM round-trip):
        # rows past the true batch size hold unspecified data -> select to 0.
        row = lax.broadcasted_iota(jnp.int32, (tile_n, 1), 0) + step * tile_n
        valid = row < batch_size
        a = jnp.where(valid, a, jnp.zeros_like(a))
        b = jnp.where(valid, b, jnp.zeros_like(b))

    # Main cross-product accumulation: S += h1_tile^T @ h2_tile  (MXU).
    s_acc[...] += lax.dot_general(a, b, _CONTRACT_ROWS,
                                  preferred_element_type=jnp.float32)

    a32 = a.astype(jnp.float32)
    b32 = b.astype(jnp.float32)

    # Per-feature sufficient statistics, all in row (lane) layout via cheap VPU
    # sublane reductions -- no extra MXU work on the binding unit.
    s1_acc[...] += jnp.sum(a32, axis=0, keepdims=True)
    q1_acc[...] += jnp.sum(a32 * a32, axis=0, keepdims=True)
    s2_acc[...] += jnp.sum(b32, axis=0, keepdims=True)
    q2_acc[...] += jnp.sum(b32 * b32, axis=0, keepdims=True)
    d_acc[...] += jnp.sum(a32 * b32, axis=0, keepdims=True)   # diag(h1^T h2)

    @pl.when(step == pl.num_programs(0) - 1)
    def _finalize():
        d_feat = s_acc.shape[0]
        n = jnp.float32(batch_size)
        inv_n = 1.0 / n
        inv_nm1 = 1.0 / (n - 1.0)       # torch.std default is unbiased (ddof=1)
        # NOTE: batch_size == 1 and zero-variance features yield inf/NaN, matching
        # the PyTorch reference's divide-by-zero behavior.

        s1 = s1_acc[...]                # (1, D) row layout
        q1 = q1_acc[...]
        s2 = s2_acc[...]
        q2 = q2_acc[...]

        mu1 = s1 * inv_n
        mu2 = s2 * inv_n
        var1 = (q1 - n * mu1 * mu1) * inv_nm1
        var2 = (q2 - n * mu2 * mu2) * inv_nm1
        inv1 = lax.rsqrt(var1)          # EUP, replaces per-element divides
        inv2 = lax.rsqrt(var2)
        m1 = mu1 * inv1
        m2 = mu2 * inv2

        # Diagonal of the cross-correlation, entirely in row layout (streamed),
        # replacing the old DxD iota/where diagonal extraction.
        diag_c = (d_acc[...] * inv_n) * inv1 * inv2 - m1 * m2   # (1, D)

        # Column-layout copies of the h1-side vectors via one tiny one-shot
        # matmul each (row 0 selector), avoiding a lane->sublane transpose op.
        sel = (lax.broadcasted_iota(jnp.int32, (8, 128), 0) == 0).astype(jnp.float32)

        def to_col(v_row):              # (1, D) -> (D, 1)
            v8 = jnp.broadcast_to(v_row, (8, d_feat))
            full = lax.dot_general(v8, sel, _CONTRACT_ROWS,
                                   preferred_element_type=jnp.float32)
            return full[:, 0:1]

        inv1_col = to_col(inv1)
        m1_col = to_col(m1)

        # cross_corr[a,b] = S[a,b]/n * inv1[a]*inv2[b] - m1[a]*m2[b]
        # Formed in place in s_acc: no second DxD f32 buffer in the epilogue.
        inv2n = inv2 * inv_n
        c = (s_acc[...] * inv2n) * inv1_col - m1_col * m2
        s_acc[...] = c

        total_sq = jnp.sum(c * c)
        diag_sq = jnp.sum(diag_c * diag_c)
        on_diag = jnp.sum((diag_c - 1.0) ** 2)
        off_diag = total_sq - diag_sq

        out_ref[0] = on_diag
        out_ref[1] = off_diag
        out_ref[2] = on_diag + lambda_coeff * off_diag
        out_ref[3] = lambda_coeff * off_diag


def _select_tiles(n, d, itemsize):
    """Generation-aware batch-tile size and VMEM limit."""
    try:
        vmem_cap = int(pltpu.get_tpu_info().vmem_capacity_bytes)
    except Exception:  # fallback if the query is unavailable
        vmem_cap = 128 * 1024 * 1024

    d_lanes = _round_up(d, 128)          # lane-padded layout width
    d_subl = _round_up(d, 8)
    s_bytes = d_subl * d_lanes * 4       # DxD f32 S scratch
    row_bytes = 6 * 8 * d_lanes * 4      # six (1, D) f32 accumulators (padded)

    # dtype-aware sublane pack: f32 -> 8, bf16 -> 16, int8/fp8 -> 32
    pack = 8 * max(1, 4 // max(1, itemsize))

    # budget for double-buffered (tn, D) input tiles, with headroom for the
    # epilogue temporaries and compiler scratch
    budget = int(vmem_cap * 0.80) - s_bytes - row_bytes - (4 << 20)

    if n <= 1024 and 4 * n * d_lanes * itemsize <= budget:
        tn = n                           # whole batch in one step (no masking)
    else:
        tn = pack
        for cand in (1024, 512, 256, 128, 64, 32, 16, 8):
            if cand % pack or cand > n:
                continue
            if 4 * cand * d_lanes * itemsize <= budget:
                tn = cand
                break

    need = s_bytes + row_bytes + 4 * tn * d_lanes * itemsize
    vmem_limit = max(32 << 20,
                     min(int(vmem_cap * 0.90), need + s_bytes // 2 + (8 << 20)))
    return tn, vmem_limit


def barlow_twins_loss(h1, h2, lambda_coeff=0.005):
    """Pallas TPU implementation of BarlowTwinsLoss.forward."""
    assert h1.shape == h2.shape and h1.ndim == 2
    n, d = h1.shape
    itemsize = jnp.dtype(h1.dtype).itemsize

    tn, vmem_limit = _select_tiles(n, d, itemsize)
    grid_n = pl.cdiv(n, tn)
    needs_mask = (n % tn) != 0

    kernel = functools.partial(
        _barlow_twins_kernel,
        lambda_coeff=float(lambda_coeff),
        batch_size=n,
        tile_n=tn,
        needs_mask=needs_mask,
    )

    out = pl.pallas_call(
        kernel,
        out_shape=jax.ShapeDtypeStruct((4,), jnp.float32),
        grid=(grid_n,),
        in_specs=[
            # Feature dim kept at full extent (allowed by BlockSpec) -> no HBM pad.
            pl.BlockSpec((tn, d), lambda i: (i, 0)),
            pl.BlockSpec((tn, d), lambda i: (i, 0)),
        ],
        out_specs=pl.BlockSpec(memory_space=pltpu.MemorySpace.SMEM),
        scratch_shapes=[
            pltpu.VMEM((d, d), jnp.float32),   # S = h1^T @ h2 (and final C)
            pltpu.VMEM((1, d), jnp.float32),   # s1
            pltpu.VMEM((1, d), jnp.float32),   # q1
            pltpu.VMEM((1, d), jnp.float32),   # s2
            pltpu.VMEM((1, d), jnp.float32),   # q2
            pltpu.VMEM((1, d), jnp.float32),   # diag(h1^T h2)
        ],
        compiler_params=pltpu.CompilerParams(
            dimension_semantics=("arbitrary",),    # batch axis = reduction
            vmem_limit_bytes=vmem_limit,
        ),
    )(h1, h2)

    return {
        "cl_loss": out[2],
        "on_diag_loss": out[0],
        "off_diag_loss": out[1],
        "weighted_off_diag_loss": out[3],
    }


def _reference(h1, h2, lambda_coeff=0.005):
    """Pure-JAX reference mirroring the PyTorch module (sanity check)."""
    n = h1.shape[0]
    std1 = jnp.std(h1, axis=0, ddof=1)
    std2 = jnp.std(h2, axis=0, ddof=1)
    z1 = (h1 - jnp.mean(h1, axis=0)) / std1
    z2 = (h2 - jnp.mean(h2, axis=0)) / std2
    c = (z1.T @ z2) / n
    eye = jnp.eye(c.shape[0])
    on_diag = jnp.sum(((c - 1.0) ** 2) * eye)
    off_diag = jnp.sum((c * c) * (1.0 - eye))
    return {
        "cl_loss": on_diag + lambda_coeff * off_diag,
        "on_diag_loss": on_diag,
        "off_diag_loss": off_diag,
        "weighted_off_diag_loss": lambda_coeff * off_diag,
    }


if __name__ == "__main__":
    batch_size = 8
    hidden = 32
    lambda_coeff = 0.005

    key = jax.random.PRNGKey(0)
    k1, k2 = jax.random.split(key)
    h1 = jax.random.normal(k1, (batch_size, hidden), dtype=jnp.float32)
    h2 = jax.random.normal(k2, (batch_size, hidden), dtype=jnp.float32)

    out = barlow_twins_loss(h1, h2, lambda_coeff)
    jax.block_until_ready(out)

    ref = _reference(h1, h2, lambda_coeff)
    for name in ("cl_loss", "on_diag_loss", "off_diag_loss",
                 "weighted_off_diag_loss"):
        assert jnp.allclose(out[name], ref[name], rtol=1e-4, atol=1e-4), (
            name, out[name], ref[name])

    print("KERNEL_OK")
</pallas_src>

<mosaic_0001>
module attributes {stable_mosaic.version = 11 : i64} {
  func.func @_barlow_twins_kernel(%arg0: i32, %arg1: memref<8x32xf32, #tpu.memory_space<vmem>>, %arg2: memref<8x32xf32, #tpu.memory_space<vmem>>, %arg3: memref<4xf32, #tpu.memory_space<smem>>, %arg4: memref<32x32xf32, #tpu.memory_space<vmem>>, %arg5: memref<1x32xf32, #tpu.memory_space<vmem>>, %arg6: memref<1x32xf32, #tpu.memory_space<vmem>>, %arg7: memref<1x32xf32, #tpu.memory_space<vmem>>, %arg8: memref<1x32xf32, #tpu.memory_space<vmem>>, %arg9: memref<1x32xf32, #tpu.memory_space<vmem>>) attributes {dimension_semantics = [#tpu.dimension_semantics<arbitrary>], iteration_bounds = array<i64: 1>, scalar_prefetch = 0 : i64, scratch_operands = 6 : i64, tpu.core_type = #tpu.core_type<tc>, window_params = [{transform_indices = @transform_0, window_bounds = array<i64: 8, 32>}, {transform_indices = @transform_1, window_bounds = array<i64: 8, 32>}, {transform_indices = @transform_2, window_bounds = array<i64: 4>}]} {
    %c0_i32 = arith.constant 0 : i32
    %0 = arith.cmpi eq, %arg0, %c0_i32 : i32
    %1 = arith.extui %0 : i1 to i32
    %c0_i32_0 = arith.constant 0 : i32
    %2 = arith.cmpi ne, %1, %c0_i32_0 : i32
    scf.if %2 {
      %cst_35 = arith.constant 0.000000e+00 : f32
      %40 = vector.broadcast %cst_35 : f32 to vector<32x32xf32>
      %c0_36 = arith.constant 0 : index
      %c0_37 = arith.constant 0 : index
      %41 = vector.load %arg4[%c0_36, %c0_37] : memref<32x32xf32, #tpu.memory_space<vmem>>, vector<32x32xf32>
      tpu.vector_store %arg4[%c0_36, %c0_37], %40 {strides = array<i32>} : memref<32x32xf32, #tpu.memory_space<vmem>>, vector<32x32xf32>,
      %cst_38 = arith.constant 0.000000e+00 : f32
      %42 = vector.broadcast %cst_38 : f32 to vector<1x32xf32>
      %c0_39 = arith.constant 0 : index
      %c0_40 = arith.constant 0 : index
      %43 = vector.load %arg5[%c0_39, %c0_40] : memref<1x32xf32, #tpu.memory_space<vmem>>, vector<1x32xf32>
      tpu.vector_store %arg5[%c0_39, %c0_40], %42 {strides = array<i32>} : memref<1x32xf32, #tpu.memory_space<vmem>>, vector<1x32xf32>,
      %cst_41 = arith.constant 0.000000e+00 : f32
      %44 = vector.broadcast %cst_41 : f32 to vector<1x32xf32>
      %c0_42 = arith.constant 0 : index
      %c0_43 = arith.constant 0 : index
      %45 = vector.load %arg6[%c0_42, %c0_43] : memref<1x32xf32, #tpu.memory_space<vmem>>, vector<1x32xf32>
      tpu.vector_store %arg6[%c0_42, %c0_43], %44 {strides = array<i32>} : memref<1x32xf32, #tpu.memory_space<vmem>>, vector<1x32xf32>,
      %cst_44 = arith.constant 0.000000e+00 : f32
      %46 = vector.broadcast %cst_44 : f32 to vector<1x32xf32>
      %c0_45 = arith.constant 0 : index
      %c0_46 = arith.constant 0 : index
      %47 = vector.load %arg7[%c0_45, %c0_46] : memref<1x32xf32, #tpu.memory_space<vmem>>, vector<1x32xf32>
      tpu.vector_store %arg7[%c0_45, %c0_46], %46 {strides = array<i32>} : memref<1x32xf32, #tpu.memory_space<vmem>>, vector<1x32xf32>,
      %cst_47 = arith.constant 0.000000e+00 : f32
      %48 = vector.broadcast %cst_47 : f32 to vector<1x32xf32>
      %c0_48 = arith.constant 0 : index
      %c0_49 = arith.constant 0 : index
      %49 = vector.load %arg8[%c0_48, %c0_49] : memref<1x32xf32, #tpu.memory_space<vmem>>, vector<1x32xf32>
      tpu.vector_store %arg8[%c0_48, %c0_49], %48 {strides = array<i32>} : memref<1x32xf32, #tpu.memory_space<vmem>>, vector<1x32xf32>,
      %cst_50 = arith.constant 0.000000e+00 : f32
      %50 = vector.broadcast %cst_50 : f32 to vector<1x32xf32>
      %c0_51 = arith.constant 0 : index
      %c0_52 = arith.constant 0 : index
      %51 = vector.load %arg9[%c0_51, %c0_52] : memref<1x32xf32, #tpu.memory_space<vmem>>, vector<1x32xf32>
      tpu.vector_store %arg9[%c0_51, %c0_52], %50 {strides = array<i32>} : memref<1x32xf32, #tpu.memory_space<vmem>>, vector<1x32xf32>,
    } else {
    }
    %c0 = arith.constant 0 : index
    %c0_1 = arith.constant 0 : index
    %3 = vector.load %arg1[%c0, %c0_1] : memref<8x32xf32, #tpu.memory_space<vmem>>, vector<8x32xf32>
    %c0_2 = arith.constant 0 : index
    %c0_3 = arith.constant 0 : index
    %4 = vector.load %arg2[%c0_2, %c0_3] : memref<8x32xf32, #tpu.memory_space<vmem>>, vector<8x32xf32>
    %c0_4 = arith.constant 0 : index
    %c0_5 = arith.constant 0 : index
    %5 = vector.load %arg4[%c0_4, %c0_5] : memref<32x32xf32, #tpu.memory_space<vmem>>, vector<32x32xf32>
    %cst = arith.constant dense<0.000000e+00> : vector<32x32xf32>
    %6 = tpu.matmul %3, %4, %cst {dimension_numbers = #tpu.dot_dimension_numbers<[0], [0], [1], [1], [0, 1, 1, 1], [], []>} : vector<8x32xf32>, vector<8x32xf32>, vector<32x32xf32> -> vector<32x32xf32>
    %7 = arith.addf %5, %6 : vector<32x32xf32>
    %c0_6 = arith.constant 0 : index
    %c0_7 = arith.constant 0 : index
    %8 = vector.load %arg4[%c0_6, %c0_7] : memref<32x32xf32, #tpu.memory_space<vmem>>, vector<32x32xf32>
    tpu.vector_store %arg4[%c0_6, %c0_7], %7 {strides = array<i32>} : memref<32x32xf32, #tpu.memory_space<vmem>>, vector<32x32xf32>,
    %c0_8 = arith.constant 0 : index
    %c0_9 = arith.constant 0 : index
    %9 = vector.load %arg5[%c0_8, %c0_9] : memref<1x32xf32, #tpu.memory_space<vmem>>, vector<1x32xf32>
    %cst_10 = arith.constant dense<0.000000e+00> : vector<32xf32>
    %10 = vector.multi_reduction <add>, %3, %cst_10 [0] : vector<8x32xf32> to vector<32xf32>
    %11 = vector.shape_cast %10 : vector<32xf32> to vector<1x32xf32>
    %12 = arith.addf %9, %11 : vector<1x32xf32>
    %c0_11 = arith.constant 0 : index
    %c0_12 = arith.constant 0 : index
    %13 = vector.load %arg5[%c0_11, %c0_12] : memref<1x32xf32, #tpu.memory_space<vmem>>, vector<1x32xf32>
    tpu.vector_store %arg5[%c0_11, %c0_12], %12 {strides = array<i32>} : memref<1x32xf32, #tpu.memory_space<vmem>>, vector<1x32xf32>,
    %c0_13 = arith.constant 0 : index
    %c0_14 = arith.constant 0 : index
    %14 = vector.load %arg6[%c0_13, %c0_14] : memref<1x32xf32, #tpu.memory_space<vmem>>, vector<1x32xf32>
    %15 = arith.mulf %3, %3 : vector<8x32xf32>
    %cst_15 = arith.constant dense<0.000000e+00> : vector<32xf32>
    %16 = vector.multi_reduction <add>, %15, %cst_15 [0] : vector<8x32xf32> to vector<32xf32>
    %17 = vector.shape_cast %16 : vector<32xf32> to vector<1x32xf32>
    %18 = arith.addf %14, %17 : vector<1x32xf32>
    %c0_16 = arith.constant 0 : index
    %c0_17 = arith.constant 0 : index
    %19 = vector.load %arg6[%c0_16, %c0_17] : memref<1x32xf32, #tpu.memory_space<vmem>>, vector<1x32xf32>
    tpu.vector_store %arg6[%c0_16, %c0_17], %18 {strides = array<i32>} : memref<1x32xf32, #tpu.memory_space<vmem>>, vector<1x32xf32>,
    %c0_18 = arith.constant 0 : index
    %c0_19 = arith.constant 0 : index
    %20 = vector.load %arg7[%c0_18, %c0_19] : memref<1x32xf32, #tpu.memory_space<vmem>>, vector<1x32xf32>
    %cst_20 = arith.constant dense<0.000000e+00> : vector<32xf32>
    %21 = vector.multi_reduction <add>, %4, %cst_20 [0] : vector<8x32xf32> to vector<32xf32>
    %22 = vector.shape_cast %21 : vector<32xf32> to vector<1x32xf32>
    %23 = arith.addf %20, %22 : vector<1x32xf32>
    %c0_21 = arith.constant 0 : index
    %c0_22 = arith.constant 0 : index
    %24 = vector.load %arg7[%c0_21, %c0_22] : memref<1x32xf32, #tpu.memory_space<vmem>>, vector<1x32xf32>
    tpu.vector_store %arg7[%c0_21, %c0_22], %23 {strides = array<i32>} : memref<1x32xf32, #tpu.memory_space<vmem>>, vector<1x32xf32>,
    %c0_23 = arith.constant 0 : index
    %c0_24 = arith.constant 0 : index
    %25 = vector.load %arg8[%c0_23, %c0_24] : memref<1x32xf32, #tpu.memory_space<vmem>>, vector<1x32xf32>
    %26 = arith.mulf %4, %4 : vector<8x32xf32>
    %cst_25 = arith.constant dense<0.000000e+00> : vector<32xf32>
    %27 = vector.multi_reduction <add>, %26, %cst_25 [0] : vector<8x32xf32> to vector<32xf32>
    %28 = vector.shape_cast %27 : vector<32xf32> to vector<1x32xf32>
    %29 = arith.addf %25, %28 : vector<1x32xf32>
    %c0_26 = arith.constant 0 : index
    %c0_27 = arith.constant 0 : index
    %30 = vector.load %arg8[%c0_26, %c0_27] : memref<1x32xf32, #tpu.memory_space<vmem>>, vector<1x32xf32>
    tpu.vector_store %arg8[%c0_26, %c0_27], %29 {strides = array<i32>} : memref<1x32xf32, #tpu.memory_space<vmem>>, vector<1x32xf32>,
    %c0_28 = arith.constant 0 : index
    %c0_29 = arith.constant 0 : index
    %31 = vector.load %arg9[%c0_28, %c0_29] : memref<1x32xf32, #tpu.memory_space<vmem>>, vector<1x32xf32>
    %32 = arith.mulf %3, %4 : vector<8x32xf32>
    %cst_30 = arith.constant dense<0.000000e+00> : vector<32xf32>
    %33 = vector.multi_reduction <add>, %32, %cst_30 [0] : vector<8x32xf32> to vector<32xf32>
    %34 = vector.shape_cast %33 : vector<32xf32> to vector<1x32xf32>
    %35 = arith.addf %31, %34 : vector<1x32xf32>
    %c0_31 = arith.constant 0 : index
    %c0_32 = arith.constant 0 : index
    %36 = vector.load %arg9[%c0_31, %c0_32] : memref<1x32xf32, #tpu.memory_space<vmem>>, vector<1x32xf32>
    tpu.vector_store %arg9[%c0_31, %c0_32], %35 {strides = array<i32>} : memref<1x32xf32, #tpu.memory_space<vmem>>, vector<1x32xf32>,
    %c0_i32_33 = arith.constant 0 : i32
    %37 = arith.cmpi eq, %arg0, %c0_i32_33 : i32
    %38 = arith.extui %37 : i1 to i32
    %c0_i32_34 = arith.constant 0 : i32
    %39 = arith.cmpi ne, %38, %c0_i32_34 : i32
    scf.if %39 {
      %cst_35 = arith.constant 1.000000e+00 : f32
      %cst_36 = arith.constant 8.000000e+00 : f32
      %40 = arith.divf %cst_35, %cst_36 : f32
      %cst_37 = arith.constant 8.000000e+00 : f32
      %cst_38 = arith.constant 1.000000e+00 : f32
      %41 = arith.subf %cst_37, %cst_38 : f32
      %cst_39 = arith.constant 1.000000e+00 : f32
      %42 = arith.divf %cst_39, %41 : f32
      %c0_40 = arith.constant 0 : index
      %c0_41 = arith.constant 0 : index
      %43 = vector.load %arg5[%c0_40, %c0_41] : memref<1x32xf32, #tpu.memory_space<vmem>>, vector<1x32xf32>
      %c0_42 = arith.constant 0 : index
      %c0_43 = arith.constant 0 : index
      %44 = vector.load %arg6[%c0_42, %c0_43] : memref<1x32xf32, #tpu.memory_space<vmem>>, vector<1x32xf32>
      %c0_44 = arith.constant 0 : index
      %c0_45 = arith.constant 0 : index
      %45 = vector.load %arg7[%c0_44, %c0_45] : memref<1x32xf32, #tpu.memory_space<vmem>>, vector<1x32xf32>
      %c0_46 = arith.constant 0 : index
      %c0_47 = arith.constant 0 : index
      %46 = vector.load %arg8[%c0_46, %c0_47] : memref<1x32xf32, #tpu.memory_space<vmem>>, vector<1x32xf32>
      %47 = vector.broadcast %40 : f32 to vector<1x32xf32>
      %48 = arith.mulf %43, %47 : vector<1x32xf32>
      %49 = vector.broadcast %40 : f32 to vector<1x32xf32>
      %50 = arith.mulf %45, %49 : vector<1x32xf32>
      %cst_48 = arith.constant 8.000000e+00 : f32
      %51 = vector.broadcast %cst_48 : f32 to vector<1x32xf32>
      %52 = arith.mulf %51, %48 : vector<1x32xf32>
      %53 = arith.mulf %52, %48 : vector<1x32xf32>
      %54 = arith.subf %44, %53 : vector<1x32xf32>
      %55 = vector.broadcast %42 : f32 to vector<1x32xf32>
      %56 = arith.mulf %54, %55 : vector<1x32xf32>
      %cst_49 = arith.constant 8.000000e+00 : f32
      %57 = vector.broadcast %cst_49 : f32 to vector<1x32xf32>
      %58 = arith.mulf %57, %50 : vector<1x32xf32>
      %59 = arith.mulf %58, %50 : vector<1x32xf32>
      %60 = arith.subf %46, %59 : vector<1x32xf32>
      %61 = vector.broadcast %42 : f32 to vector<1x32xf32>
      %62 = arith.mulf %60, %61 : vector<1x32xf32>
      %63 = math.rsqrt %56 : vector<1x32xf32>
      %64 = math.rsqrt %62 : vector<1x32xf32>
      %65 = arith.mulf %48, %63 : vector<1x32xf32>
      %66 = arith.mulf %50, %64 : vector<1x32xf32>
      %c0_50 = arith.constant 0 : index
      %c0_51 = arith.constant 0 : index
      %67 = vector.load %arg9[%c0_50, %c0_51] : memref<1x32xf32, #tpu.memory_space<vmem>>, vector<1x32xf32>
      %68 = vector.broadcast %40 : f32 to vector<1x32xf32>
      %69 = arith.mulf %67, %68 : vector<1x32xf32>
      %70 = arith.mulf %69, %63 : vector<1x32xf32>
      %71 = arith.mulf %70, %64 : vector<1x32xf32>
      %72 = arith.mulf %65, %66 : vector<1x32xf32>
      %73 = arith.subf %71, %72 : vector<1x32xf32>
      %74 = tpu.iota {dimensions = array<i32: 0>} : vector<8x128xi32>
      %c0_i32_52 = arith.constant 0 : i32
      %75 = vector.broadcast %c0_i32_52 : i32 to vector<8x128xi32>
      %76 = arith.cmpi eq, %74, %75 : vector<8x128xi32>
      %77 = arith.extui %76 : vector<8x128xi1> to vector<8x128xi32>
      %78 = arith.sitofp %77 : vector<8x128xi32> to vector<8x128xf32>
      %79 = vector.shape_cast %63 : vector<1x32xf32> to vector<1x32xf32>
      %80 = vector.broadcast %79 : vector<1x32xf32> to vector<8x32xf32>
      %cst_53 = arith.constant dense<0.000000e+00> : vector<32x128xf32>
      %81 = tpu.matmul %80, %78, %cst_53 {dimension_numbers = #tpu.dot_dimension_numbers<[0], [0], [1], [1], [0, 1, 1, 1], [], []>} : vector<8x32xf32>, vector<8x128xf32>, vector<32x128xf32> -> vector<32x128xf32>
      %82 = vector.extract_strided_slice %81 {offsets = [0, 0], sizes = [32, 1], strides = [1, 1]} : vector<32x128xf32> to vector<32x1xf32>
      %83 = vector.shape_cast %65 : vector<1x32xf32> to vector<1x32xf32>
      %84 = vector.broadcast %83 : vector<1x32xf32> to vector<8x32xf32>
      %cst_54 = arith.constant dense<0.000000e+00> : vector<32x128xf32>
      %85 = tpu.matmul %84, %78, %cst_54 {dimension_numbers = #tpu.dot_dimension_numbers<[0], [0], [1], [1], [0, 1, 1, 1], [], []>} : vector<8x32xf32>, vector<8x128xf32>, vector<32x128xf32> -> vector<32x128xf32>
      %86 = vector.extract_strided_slice %85 {offsets = [0, 0], sizes = [32, 1], strides = [1, 1]} : vector<32x128xf32> to vector<32x1xf32>
      %87 = vector.broadcast %40 : f32 to vector<1x32xf32>
      %88 = arith.mulf %64, %87 : vector<1x32xf32>
      %c0_55 = arith.constant 0 : index
      %c0_56 = arith.constant 0 : index
      %89 = vector.load %arg4[%c0_55, %c0_56] : memref<32x32xf32, #tpu.memory_space<vmem>>, vector<32x32xf32>
      %90 = vector.broadcast %88 : vector<1x32xf32> to vector<32x32xf32>
      %91 = arith.mulf %89, %90 : vector<32x32xf32>
      %92 = vector.broadcast %82 : vector<32x1xf32> to vector<32x32xf32>
      %93 = arith.mulf %91, %92 : vector<32x32xf32>
      %94 = vector.broadcast %86 : vector<32x1xf32> to vector<32x32xf32>
      %95 = vector.broadcast %66 : vector<1x32xf32> to vector<32x32xf32>
      %96 = arith.mulf %94, %95 : vector<32x32xf32>
      %97 = arith.subf %93, %96 : vector<32x32xf32>
      %c0_57 = arith.constant 0 : index
      %c0_58 = arith.constant 0 : index
      %98 = vector.load %arg4[%c0_57, %c0_58] : memref<32x32xf32, #tpu.memory_space<vmem>>, vector<32x32xf32>
      tpu.vector_store %arg4[%c0_57, %c0_58], %97 {strides = array<i32>} : memref<32x32xf32, #tpu.memory_space<vmem>>, vector<32x32xf32>,
      %99 = arith.mulf %97, %97 : vector<32x32xf32>
      %100 = vector.shape_cast %99 : vector<32x32xf32> to vector<1x32x32xf32>
      %cst_59 = arith.constant dense<0.000000e+00> : vector<1xf32>
      %101 = vector.multi_reduction <add>, %100, %cst_59 [1, 2] : vector<1x32x32xf32> to vector<1xf32>
      %102 = vector.shape_cast %101 : vector<1xf32> to vector<1x1x1xf32>
      %103 = vector.extract %102[0, 0, 0] : f32 from vector<1x1x1xf32>
      %104 = arith.mulf %73, %73 : vector<1x32xf32>
      %105 = vector.shape_cast %104 : vector<1x32xf32> to vector<1x1x32xf32>
      %cst_60 = arith.constant dense<0.000000e+00> : vector<1xf32>
      %106 = vector.multi_reduction <add>, %105, %cst_60 [1, 2] : vector<1x1x32xf32> to vector<1xf32>
      %107 = vector.shape_cast %106 : vector<1xf32> to vector<1x1x1xf32>
      %108 = vector.extract %107[0, 0, 0] : f32 from vector<1x1x1xf32>
      %cst_61 = arith.constant 1.000000e+00 : f32
      %109 = vector.broadcast %cst_61 : f32 to vector<1x32xf32>
      %110 = arith.subf %73, %109 : vector<1x32xf32>
      %111 = arith.mulf %110, %110 : vector<1x32xf32>
      %112 = vector.shape_cast %111 : vector<1x32xf32> to vector<1x1x32xf32>
      %cst_62 = arith.constant dense<0.000000e+00> : vector<1xf32>
      %113 = vector.multi_reduction <add>, %112, %cst_62 [1, 2] : vector<1x1x32xf32> to vector<1xf32>
      %114 = vector.shape_cast %113 : vector<1xf32> to vector<1x1x1xf32>
      %115 = vector.extract %114[0, 0, 0] : f32 from vector<1x1x1xf32>
      %116 = arith.subf %103, %108 : f32
      %c0_63 = arith.constant 0 : index
      %117 = memref.load %arg3[%c0_63] : memref<4xf32, #tpu.memory_space<smem>>
      memref.store %115, %arg3[%c0_63] : memref<4xf32, #tpu.memory_space<smem>>
      %c1 = arith.constant 1 : index
      %118 = memref.load %arg3[%c1] : memref<4xf32, #tpu.memory_space<smem>>
      memref.store %116, %arg3[%c1] : memref<4xf32, #tpu.memory_space<smem>>
      %cst_64 = arith.constant 5.000000e-03 : f32
      %119 = arith.mulf %cst_64, %116 : f32
      %120 = arith.addf %115, %119 : f32
      %c2 = arith.constant 2 : index
      %121 = memref.load %arg3[%c2] : memref<4xf32, #tpu.memory_space<smem>>
      memref.store %120, %arg3[%c2] : memref<4xf32, #tpu.memory_space<smem>>
      %cst_65 = arith.constant 5.000000e-03 : f32
      %122 = arith.mulf %cst_65, %116 : f32
      %c3 = arith.constant 3 : index
      %123 = memref.load %arg3[%c3] : memref<4xf32, #tpu.memory_space<smem>>
      memref.store %122, %arg3[%c3] : memref<4xf32, #tpu.memory_space<smem>>
    } else {
    }
    return
  }
  func.func @transform_0(%arg0: i32) -> (i32, i32) {
    %c0_i32 = arith.constant 0 : i32
    %c0_i32_0 = arith.constant 0 : i32
    return %arg0, %c0_i32 : i32, i32
  }
  func.func @transform_1(%arg0: i32) -> (i32, i32) {
    %c0_i32 = arith.constant 0 : i32
    %c0_i32_0 = arith.constant 0 : i32
    return %arg0, %c0_i32 : i32, i32
  }
  func.func @transform_2(%arg0: i32) -> i32 {
    %c0_i32 = arith.constant 0 : i32
    %c0_i32_0 = arith.constant 0 : i32
    return %c0_i32 : i32
  }
}

</mosaic_0001>

<bundles_post_ra>
// kernel: tpu_custom_call.1
= control target key start
LH: loop header
LB: loop body
LE: loop exit
PB: predicated region body
PF: predicated region fallthrough
CT: control target
= control target key end

     0   :  { %7 = vsyncpa [#allocation9], 0  ;;  %s954_s0 = inlined_call_operand.hbm [shape: f32[8,32], index: 0, kind: input, shape index: {}]   ;;  %s955_s1 = inlined_call_operand.hbm [shape: f32[8,32], index: 1, kind: input, shape index: {}]   ;;  %s956_s2 = inlined_call_operand.hbm [shape: f32[4], index: 2, kind: output, shape index: {}]  }
   0x1   :  { %8 = vsyncpa [#allocation12], 0 }
   0x2   :  { %9 = vsyncpa [#allocation10], 0  ;;  %s833_s9 = smov [#allocation8]   ;;  %s834_s11 = smov [#allocation11]  }
   0x3   :  { %s16_s10 = sshll.u32 %s833_s9, 4  ;;  %s26_s12 = sshll.u32 %s834_s11, 4  ;;  %s17_s10 = int_to_ptr.vmem [resolvable:$true] %s16_s10  ;;  %s27_s12 = int_to_ptr.vmem [resolvable:$true] %s26_s12 }
   0x4   :  { %s773_s15 = scalar_lea.hbm %s954_s0, 128 }
   0x5   :  { %p774_p0 = scmp.ne.s32.totalorder %s954_s0, %s773_s15  ;;  %p777_p1 = scmp.lt.u32.totalorder %s773_s15, %s954_s0 }
   0x7   :  { %p779_p2 = pnand %p777_p1, %p774_p0 }
   0x9   :  { %782 = shalt.err (!%p779_p2)
}
   0xa   :  { %s783_s20 = scalar_lea.vmem %s17_s10, 128  ;;  %p788_p4 = scmp.lt.s32.totalorder %s17_s10, %s17_s10 }
   0xb   :  { %p784_p3 = scmp.ne.s32.totalorder %s17_s10, %s783_s20  ;;  %p789_p5 = scmp.lt.s32.totalorder %s783_s20, %s783_s20 }
   0xd   :  { %p790_p6 = por %p789_p5, %p788_p4 }
   0xf   :  { %p791_p7 = pnand %p790_p6, %p784_p3 }
  0x11   :  { %794 = shalt.err (!%p791_p7)
}
  0x12   :  { %19 = dma.hbm_to_vmem [thread:$0]  %s954_s0, 128, %s17_s10, [#allocation9]  }
  0x13   :  { %s795_s25 = scalar_lea.hbm %s955_s1, 128 }
  0x14   :  { %p796_p8 = scmp.ne.s32.totalorder %s955_s1, %s795_s25  ;;  %p799_p9 = scmp.lt.u32.totalorder %s795_s25, %s955_s1 }
  0x16   :  { %p801_p10 = pnand %p799_p9, %p796_p8 }
  0x18   :  { %804 = shalt.err (!%p801_p10)
}
  0x19   :  { %s805_s30 = scalar_lea.vmem %s27_s12, 128  ;;  %p810_p12 = scmp.lt.s32.totalorder %s27_s12, %s27_s12 }
  0x1a   :  { %p806_p11 = scmp.ne.s32.totalorder %s27_s12, %s805_s30  ;;  %p811_p13 = scmp.lt.s32.totalorder %s805_s30, %s805_s30 }
  0x1c   :  { %p812_p0 = por %p811_p13, %p810_p12 }
  0x1e   :  { %p813_p1 = pnand %p812_p0, %p806_p11 }
  0x20   :  { %816 = shalt.err (!%p813_p1)
}
  0x21   :  { %29 = dma.hbm_to_vmem [thread:$0]  %s955_s1, 128, %s27_s12, [#allocation12]  }
  0x22   :  { %827 = dma.done.wait [#allocation9], 128  }
  0x23   :  { %828 = vsyncadd [#allocation9], 4294967168 }
  0x24   :  { %829 = dma.done.wait [#allocation12], 128  }
  0x25   :  { %830 = vsyncadd [#allocation12], 4294967168  ;;  %vm40_vm0 = vcmask 261120   ;;  %vm45_vm1 = vcmask 253952   ;;  %v835_v0 = vmov 0.0   ;;  %v51_v1 = vld [vmem:[#allocation8] sm:$0xff]  ;;  %v277_v27 = vlaneseq }
  0x26   :  { %46 = vst.msk [vmem:[#allocation3] sm:$0x1] %vm45_vm1, %v835_v0  ;;  %47 = vst.msk [vmem:[#allocation4] sm:$0x1] %vm45_vm1, %v835_v0  ;;  %v52_v2 = vld [vmem:[#allocation11] sm:$0xff]  ;;  %57 = vxpose.xlu0.b32.start.end [1/1] (short) (narrow) %v51_v1, 32  ;;  %v208_v6 = vmul.f32 %v51_v1, %v51_v1 }
  0x27   :  { %48 = vst.msk [vmem:[#allocation5] sm:$0x1] %vm45_vm1, %v835_v0  ;;  %49 = vst.msk [vmem:[#allocation6] sm:$0x1] %vm45_vm1, %v835_v0  ;;  %v219_v3 = vsel %vm40_vm0, %v52_v2, 0.0  ;;  %v229_v4 = vmul.f32 %v52_v2, %v52_v2  ;;  %v197_v5 = vsel %vm40_vm0, %v51_v1, 0.0  ;;  %729 = vmatprep.subr.mxu0 %v52_v2  ;;  %v240_v9 = vmul.f32 %v52_v2, %v51_v1 }
  0x28   :  { %50 = vst.msk [vmem:[#allocation7] sm:$0x1] %vm45_vm1, %v835_v0  ;;  %v220_v7 = vrot.slane %v219_v3, 4  ;;  %v198_v8 = vrot.slane %v197_v5, 4  ;;  %730 = vmatpush3.msra.mxu0 %v52_v2  ;;  %753 = vmatprep.subr.mxu1 %v52_v2  ;;  %v209_v11 = vsel %vm40_vm0, %v208_v6, 0.0  ;;  %v278_v42 = vshrl.u32 %v277_v27, 7 }
  0x29   :  { %41 = vst.msk [vmem:[#allocation2] sm:$0xff] %vm40_vm0, %v835_v0  ;;  %42 = vst.msk [vmem:[#allocation2 + $0x8] sm:$0xff] %vm40_vm0, %v835_v0  ;;  %v230_v10 = vsel %vm40_vm0, %v229_v4, 0.0  ;;  %754 = vmatpush3.msra.mxu1 %v52_v2  ;;  %v210_v15 = vrot.slane %v209_v11, 4  ;;  %v241_v16 = vsel %vm40_vm0, %v240_v9, 0.0  ;;  %v836_v51 = vmov 1.0  }
  0x2a   :  { %43 = vst.msk [vmem:[#allocation2 + $0x10] sm:$0xff] %vm40_vm0, %v835_v0  ;;  %44 = vst.msk [vmem:[#allocation2 + $0x18] sm:$0xff] %vm40_vm0, %v835_v0  ;;  %v221_v12 = vadd.f32 %v220_v7, %v219_v3  ;;  %v231_v13 = vrot.slane %v230_v10, 4  ;;  %v199_v14 = vadd.f32 %v198_v8, %v197_v5  ;;  %v242_v21 = vrot.slane %v241_v16, 4  ;;  %s817_s11 = scalar_lea.hbm %s956_s2, 16 }
  0x2b   :  { %v211_v20 = vadd.f32 %v210_v15, %v209_v11  ;;  %vm279_vm2 = vcmp.eq.s32.totalorder %v278_v42, 0  ;;  %v899_v61 = vsub.s32 0, %v278_v42  ;;  %vm89_vm3 = vcmask 64512   ;;  %p818_p2 = scmp.ne.s32.totalorder %s956_s2, %s817_s11  ;;  %p821_p3 = scmp.lt.u32.totalorder %s817_s11, %s956_s2 }
  0x2c   :  { %v222_v17 = vrot.slane %v221_v12, 2  ;;  %v232_v18 = vadd.f32 %v231_v13, %v230_v10  ;;  %v200_v19 = vrot.slane %v199_v14, 2  ;;  %v243_v26 = vadd.f32 %v242_v21, %v241_v16  ;;  %737 = vmatprep.subr.msk.mxu1 %vm279_vm2, %v836_v51  ;;  %745 = vmatprep.subr.msk.mxu0 %vm279_vm2, %v836_v51 }
  0x2d   :  { %v212_v25 = vrot.slane %v211_v20, 2  ;;  %v196_v32 = vld [vmem:[#allocation3] sm:$0x1]  ;;  %v207_v39 = vld [vmem:[#allocation4] sm:$0x1]  ;;  %p823_p4 = pnand %p821_p3, %p818_p2 }
  0x2e   :  { %v223_v22 = vadd.f32 %v222_v17, %v221_v12  ;;  %v233_v23 = vrot.slane %v232_v18, 2  ;;  %v201_v24 = vadd.f32 %v200_v19, %v199_v14  ;;  %v218_v33 = vld [vmem:[#allocation5] sm:$0x1]  ;;  %v244_v34 = vrot.slane %v243_v26, 2  ;;  %v228_v40 = vld [vmem:[#allocation6] sm:$0x1] }
  0x2f   :  { %v213_v31 = vadd.f32 %v212_v25, %v211_v20  ;;  %v239_v50 = vld [vmem:[#allocation7] sm:$0x1]  ;;  %v837_v14 = vmov 0  }
  0x30   :  { %v224_v28 = vrot.slane %v223_v22, 1  ;;  %v234_v29 = vadd.f32 %v233_v23, %v232_v18  ;;  %v202_v30 = vrot.slane %v201_v24, 1  ;;  %v245_v41 = vadd.f32 %v244_v34, %v243_v26  ;;  %v54_v15 = vld [vmem:[#allocation2 + $0x8] sm:$0xff]  ;;  %v53_v16 = vld [vmem:[#allocation2] sm:$0xff] }
  0x31   :  { %v214_v38 = vrot.slane %v213_v31, 1  ;;  %v56_v21 = vld [vmem:[#allocation2 + $0x18] sm:$0xff] }
  0x32   :  { %v225_v35 = vadd.f32 %v224_v28, %v223_v22  ;;  %v235_v36 = vrot.slane %v234_v29, 1  ;;  %v203_v37 = vadd.f32 %v202_v30, %v201_v24  ;;  %v246_v47 = vrot.slane %v245_v41, 1  ;;  %v55_v22 = vld [vmem:[#allocation2 + $0x10] sm:$0xff] }
  0x33   :  { %v215_v45 = vadd.f32 %v214_v38, %v213_v31 }
  0x34   :  { %v236_v43 = vadd.f32 %v235_v36, %v234_v29  ;;  %v204_v44 = vadd.f32 %v203_v37, %v196_v32  ;;  %v226_v46 = vadd.f32 %v225_v35, %v218_v33  ;;  %v247_v52 = vadd.f32 %v246_v47, %v245_v41 }
  0x35   :  { %v216_v48 = vadd.f32 %v215_v45, %v207_v39 }
  0x36   :  { %206 = vst.msk [vmem:[#allocation3] sm:$0x1] %vm45_vm1, %v204_v44  ;;  %v237_v49 = vadd.f32 %v236_v43, %v228_v40  ;;  %227 = vst.msk [vmem:[#allocation5] sm:$0x1] %vm45_vm1, %v226_v46  ;;  %v248_v53 = vadd.f32 %v247_v52, %v239_v50 }
  0x37   :  { %217 = vst.msk [vmem:[#allocation4] sm:$0x1] %vm45_vm1, %v216_v48 }
  0x38   :  { %238 = vst.msk [vmem:[#allocation6] sm:$0x1] %vm45_vm1, %v237_v49  ;;  %249 = vst.msk [vmem:[#allocation7] sm:$0x1] %vm45_vm1, %v248_v53 }
  0x3d   :  { %v253_v54 = vld [vmem:[#allocation3] sm:$0x1]  ;;  %v255_v34 = vld [vmem:[#allocation5] sm:$0x1] }
  0x3e   :  { %v257_v55 = vmul.f32 0.125, %v253_v54  ;;  %v254_v57 = vld [vmem:[#allocation4] sm:$0x1]  ;;  %v258_v36 = vmul.f32 0.125, %v255_v34 }
  0x3f   :  { %v256_v39 = vld [vmem:[#allocation6] sm:$0x1]  ;;  %v271_v42 = vld [vmem:[#allocation7] sm:$0x1] }
  0x40   :  { %v259_v56 = vmul.f32 8.0, %v257_v55  ;;  %v263_v37 = vmul.f32 8.0, %v258_v36  ;;  %v272_v43 = vmul.f32 0.125, %v271_v42 }
  0x42   :  { %v260_v58 = vmul.f32 %v259_v56, %v257_v55  ;;  %v264_v38 = vmul.f32 %v263_v37, %v258_v36 }
  0x44   :  { %v261_v59 = vsub.f32 %v254_v57, %v260_v58  ;;  %v265_v40 = vsub.f32 %v256_v39, %v264_v38 }
  0x46   :  { %v262_v60 = vmul.f32 0.14285715, %v261_v59  ;;  %v266_v41 = vmul.f32 0.14285715, %v265_v40 }
  0x48   :  { %769 = vrsqrt.f32 %v262_v60 }
  0x49   :  { %771 = vrsqrt.f32 %v266_v41 }
  0x52   :  { %v901_v62 = vpop.eup %769 }
  0x53   :  { %v286_v63 = vrot.slane %v901_v62, %v899_v61  ;;  %v906_v0 = vmul.f32 %v901_v62, %v257_v55  ;;  %v273_v44 = vmul.f32 %v901_v62, %v272_v43  ;;  %v772_v45 = vpop.eup %771 }
  0x54   :  { %v270_v46 = vmul.f32 %v772_v45, %v258_v36  ;;  %v552_v52 = vmul.f32 0.125, %v772_v45 }
  0x55   :  { %288 = vxpose.xlu0.b32.start.end [1/1] (short) (narrow) %v286_v63, 32  ;;  %v421_v1 = vrot.slane %v906_v0, %v899_v61  ;;  %v274_v48 = vmul.f32 %v772_v45, %v273_v44 }
  0x56   :  { %v275_v47 = vmul.f32 %v270_v46, %v906_v0  ;;  %v561_v53 = vrot.slane %v552_v52, %v899_v61  ;;  %v615_v56 = vrot.slane %v270_v46, %v899_v61 }
  0x57   :  { %423 = vxpose.xlu1.b32.start.end [1/1] (short) (narrow) %v421_v1, 32 }
  0x58   :  { %v276_v49 = vsub.f32 %v274_v48, %v275_v47 }
  0x5a   :  { %v649_v50 = vmul.f32 %v276_v49, %v276_v49 }
  0x75   :  { %768 = vset.pattern.permute.xlu1 %v837_v14 }
  0x7e   :  { %767 = vset.pattern.permute.xlu0 %v837_v14 }
  0xa6   :  { %v73_v2 = vpop.trf.xlu0 }
  0xa7   :  { %731 = vmatprep.mubr.msk.f32.mxu0 %vm89_vm3, %v73_v2 }
  0xaa   :  { %v74_v3 = vpop.trf.xlu0 }
  0xab   :  { %732 = vmatmul.mubr.msk.f32.vlgmr.msra.gmra.mrb[0].mxu0 %vm89_vm3, %v74_v3 }
  0xac   :  { %746 = vmatpush3.msk.msra.mxu0 %vm279_vm2, %v836_v51 }
  0xae   :  { %v75_v4 = vpop.trf.xlu0 }
  0xaf   :  { %734 = vmatprep.mubr.msk.f32.mxu1 %vm89_vm3, %v75_v4 }
  0xb2   :  { %v76_v5 = vpop.trf.xlu0 }
  0xb3   :  { %735 = vmatmul.mubr.msk.f32.vlgmr.msra.gmra.mrb[0].mxu1 %vm89_vm3, %v76_v5 }
  0xb4   :  { %738 = vmatpush3.msk.msra.mxu1 %vm279_vm2, %v836_v51  ;;  %v650_v51 = vsel %vm45_vm1, %v649_v50, 0.0 }
  0xd5   :  { %v304_v6 = vpop.trf.xlu0 }
  0xd6   :  { %739 = vmatprep.mubr.msk.f32.mxu1 %vm89_vm3, %v304_v6 }
  0xd7   :  { %v439_v7 = vpop.trf.xlu1 }
  0xd8   :  { %747 = vmatprep.mubr.msk.f32.mxu0 %vm89_vm3, %v439_v7 }
  0xd9   :  { %v305_v8 = vpop.trf.xlu0 }
  0xda   :  { %740 = vmatmul.mubr.msk.f32.vlgmr.msra.gmra.mrb[2].mxu1 %vm89_vm3, %v305_v8 }
  0xdb   :  { %v440_v9 = vpop.trf.xlu1 }
  0xdc   :  { %748 = vmatmul.mubr.msk.f32.vlgmr.msra.gmra.mrb[2].mxu0 %vm89_vm3, %v440_v9 }
  0xdd   :  { %v306_v10 = vpop.trf.xlu0 }
  0xde   :  { %742 = vmatprep.mubr.msk.f32.mxu1 %vm89_vm3, %v306_v10 }
  0xdf   :  { %v441_v11 = vpop.trf.xlu1 }
  0xe0   :  { %750 = vmatprep.mubr.msk.f32.mxu0 %vm89_vm3, %v441_v11 }
  0xe1   :  { %v307_v12 = vpop.trf.xlu0 }
  0xe2   :  { %743 = vmatmul.mubr.msk.f32.gmra.mrb[4].mxu1 %vm89_vm3, %v307_v12 }
  0xe3   :  { %v442_v13 = vpop.trf.xlu1 }
  0xe4   :  { %751 = vmatmul.mubr.msk.f32.gmra.mrb[4].mxu0 %vm89_vm3, %v442_v13 }
 0x17e   :  { %v733_v17 = vpop.f32.mrb[0].mxu0 }
 0x17f   :  { %v188_v18 = vadd.f32 %v733_v17, %v54_v15  ;;  %v168_v19 = vpop.f32.mrb[1].mxu0 }
 0x180   :  { %v187_v20 = vadd.f32 %v168_v19, %v53_v16 }
 0x181   :  { %193 = vst.msk [vmem:[#allocation2 + $0x8] sm:$0xff] %vm40_vm0, %v188_v18 }
 0x182   :  { %192 = vst.msk [vmem:[#allocation2] sm:$0xff] %vm40_vm0, %v187_v20 }
 0x186   :  { %v736_v23 = vpop.f32.mrb[0].mxu1 }
 0x187   :  { %v190_v24 = vadd.f32 %v736_v23, %v56_v21  ;;  %v178_v25 = vpop.f32.mrb[1].mxu1 }
 0x188   :  { %v189_v26 = vadd.f32 %v178_v25, %v55_v22  ;;  %v554_v54 = vld [vmem:[#allocation2 + $0x8] sm:$0xff]  ;;  %v713_v25 = vadd.f32 -1.0, %v276_v49 }
 0x189   :  { %195 = vst.msk [vmem:[#allocation2 + $0x18] sm:$0xff] %vm40_vm0, %v190_v24  ;;  %v564_v58 = vmul.f32 %v561_v53, %v554_v54  ;;  %v553_v59 = vld [vmem:[#allocation2] sm:$0xff] }
 0x18a   :  { %194 = vst.msk [vmem:[#allocation2 + $0x10] sm:$0xff] %vm40_vm0, %v189_v26  ;;  %v563_v0 = vmul.f32 %v561_v53, %v553_v59 }
 0x190   :  { %v556_v9 = vld [vmem:[#allocation2 + $0x18] sm:$0xff] }
 0x191   :  { %v555_v8 = vld [vmem:[#allocation2 + $0x10] sm:$0xff]  ;;  %v566_v15 = vmul.f32 %v561_v53, %v556_v9 }
 0x192   :  { %v565_v61 = vmul.f32 %v561_v53, %v555_v8 }
 0x1ad   :  { %v741_v27 = vpop.f32.mrb[2].mxu1 }
 0x1ae   :  { %574 = vperm.xlu0 %767, %v741_v27   ;;  %v398_v28 = vpop.f32.mrb[3].mxu1 }
 0x1af   :  { %569 = vperm.xlu1 %768, %v398_v28   ;;  %v749_v29 = vpop.f32.mrb[2].mxu0 }
 0x1b0   :  { %v533_v30 = vpop.f32.mrb[3].mxu0 }
 0x1b3   :  { %598 = vperm.xlu1 %768, %v749_v29  }
 0x1b5   :  { %v744_v31 = vpop.f32.mrb[4].mxu1 }
 0x1b6   :  { %v408_v32 = vpop.f32.mrb[5].mxu1 }
 0x1b7   :  { %593 = vperm.xlu1 %768, %v533_v30   ;;  %v752_v33 = vpop.f32.mrb[4].mxu0  ;;  %v661_v30 = vmul.f32 %v713_v25, %v713_v25 }
 0x1b8   :  { %v543_v35 = vpop.f32.mrb[5].mxu0 }
 0x1bb   :  { %584 = vperm.xlu1 %768, %v744_v31  }
 0x1bf   :  { %579 = vperm.xlu1 %768, %v408_v32   ;;  %v662_v32 = vsel %vm45_vm1, %v661_v30, 0.0 }
 0x1c3   :  { %603 = vperm.xlu1 %768, %v543_v35  }
 0x1c7   :  { %608 = vperm.xlu1 %768, %v752_v33  }
 0x1eb   :  { %651 = vadd.xlane.f32.xlu1 %v650_v51 }
 0x22d   :  { %v575_v57 = vpop.permute.xlu0 %574 }
 0x22e   :  { %v570_v55 = vpop.permute.xlu1 %569  ;;  %v588_v62 = vmul.f32 %v575_v57, %v564_v58 }
 0x22f   :  { %v587_v3 = vmul.f32 %v570_v55, %v563_v0 }
 0x232   :  { %v599_v60 = vpop.permute.xlu1 %598 }
 0x233   :  { %v618_v63 = vmul.f32 %v615_v56, %v599_v60 }
 0x235   :  { %v622_v1 = vsub.f32 %v588_v62, %v618_v63 }
 0x236   :  { %v594_v2 = vpop.permute.xlu1 %593 }
 0x237   :  { %626 = vst.msk [vmem:[#allocation2 + $0x8] sm:$0xff] %vm40_vm0, %v622_v1  ;;  %v617_v4 = vmul.f32 %v615_v56, %v594_v2  ;;  %v630_v14 = vmul.f32 %v622_v1, %v622_v1 }
 0x239   :  { %v621_v5 = vsub.f32 %v587_v3, %v617_v4  ;;  %v634_v23 = vsel %vm40_vm0, %v630_v14, 0.0 }
 0x23a   :  { %v585_v6 = vpop.permute.xlu1 %584 }
 0x23b   :  { %625 = vst.msk [vmem:[#allocation2] sm:$0xff] %vm40_vm0, %v621_v5  ;;  %v629_v11 = vmul.f32 %v621_v5, %v621_v5  ;;  %v590_v18 = vmul.f32 %v585_v6, %v566_v15 }
 0x23d   :  { %v633_v21 = vsel %vm40_vm0, %v629_v11, 0.0 }
 0x23e   :  { %v580_v7 = vpop.permute.xlu1 %579  ;;  %v635_v26 = vadd.f32 %v634_v23, %v633_v21 }
 0x23f   :  { %v589_v12 = vmul.f32 %v580_v7, %v565_v61 }
 0x242   :  { %v604_v10 = vpop.permute.xlu1 %603 }
 0x243   :  { %v619_v13 = vmul.f32 %v615_v56, %v604_v10 }
 0x245   :  { %v623_v16 = vsub.f32 %v589_v12, %v619_v13 }
 0x246   :  { %v609_v17 = vpop.permute.xlu1 %608 }
 0x247   :  { %627 = vst.msk [vmem:[#allocation2 + $0x10] sm:$0xff] %vm40_vm0, %v623_v16  ;;  %v631_v19 = vmul.f32 %v623_v16, %v623_v16  ;;  %v620_v20 = vmul.f32 %v615_v56, %v609_v17 }
 0x249   :  { %v624_v22 = vsub.f32 %v590_v18, %v620_v20  ;;  %v636_v24 = vsel %vm40_vm0, %v631_v19, 0.0 }
 0x24a   :  { %v637_v28 = vadd.f32 %v636_v24, %v635_v26 }
 0x24b   :  { %628 = vst.msk [vmem:[#allocation2 + $0x18] sm:$0xff] %vm40_vm0, %v624_v22  ;;  %v632_v27 = vmul.f32 %v624_v22, %v624_v22 }
 0x24d   :  { %v638_v29 = vsel %vm40_vm0, %v632_v27, 0.0 }
 0x24e   :  { %v639_v31 = vadd.f32 %v638_v29, %v637_v28 }
 0x250   :  { %640 = vadd.xlane.f32.xlu0 %v639_v31 }
 0x254   :  { %663 = vadd.xlane.f32.xlu0 %v662_v32 }
 0x278   :  { %v652_v33 = vpop.xlane.xlu1 %651 }
 0x279   :  { %v653_v34 = vrot.slane %v652_v33, 4 }
 0x27b   :  { %v654_v35 = vadd.f32 %v653_v34, %v652_v33 }
 0x27d   :  { %v655_v36 = vrot.slane %v654_v35, 2 }
 0x27f   :  { %v656_v40 = vadd.f32 %v655_v36, %v654_v35 }
 0x281   :  { %v657_v46 = vrot.slane %v656_v40, 1 }
 0x283   :  { %v658_v51 = vadd.f32 %v657_v46, %v656_v40 }
 0x2dd   :  { %v641_v37 = vpop.xlane.xlu0 %640 }
 0x2de   :  { %v642_v38 = vrot.slane %v641_v37, 4 }
 0x2e0   :  { %v643_v39 = vadd.f32 %v642_v38, %v641_v37 }
 0x2e1   :  { %v664_v41 = vpop.xlane.xlu0 %663 }
 0x2e2   :  { %v644_v42 = vrot.slane %v643_v39, 2  ;;  %v665_v43 = vrot.slane %v664_v41, 4 }
 0x2e4   :  { %v666_v44 = vadd.f32 %v665_v43, %v664_v41  ;;  %v645_v45 = vadd.f32 %v644_v42, %v643_v39 }
 0x2e6   :  { %v667_v47 = vrot.slane %v666_v44, 2  ;;  %v646_v48 = vrot.slane %v645_v45, 1 }
 0x2e8   :  { %v668_v49 = vadd.f32 %v667_v47, %v666_v44  ;;  %v647_v50 = vadd.f32 %v646_v48, %v645_v45 }
 0x2ea   :  { %755 = vpush %v647_v50  ;;  %v669_v52 = vrot.slane %v668_v49, 1 }
 0x2eb   :  { %757 = vpush %v658_v51 }
 0x2ec   :  { %v670_v53 = vadd.f32 %v669_v52, %v668_v49 }
 0x2ee   :  { %759 = vpush %v670_v53 }
 0x31b   :  { %s756_s1 = spop %755 }
 0x31c   :  { %s758_s4 = spop %757 }
 0x31d   :  { %s672_s5 = ssub.f32 %s756_s1, %s758_s4 }
 0x31f   :  { %676 = sst [smem:[#allocation13 + $0x1]] %s672_s5  ;;  %s760_s6 = spop %759 }
 0x320   :  { %674 = sst [smem:[#allocation13]] %s760_s6  ;;  %s677_s7 = smul.f32 0.005, %s672_s5 }
 0x322   :  { %s678_s8 = sadd.f32 %s760_s6, %s677_s7 }
 0x323   :  { %682 = sst [smem:[#allocation13 + $0x3]] %s677_s7 }
 0x324   :  { %680 = sst [smem:[#allocation13 + $0x2]] %s678_s8 }
 0x325   :  { %826 = shalt.err (!%p823_p4)
}
 0x326   :  { %s838_s16 = smov [#allocation13]  }
 0x327   :  { %690 = dma.smem_to_hbm %s838_s16, 16, %s956_s2, [#allocation10]  }
 0x328   :  { %831 = dma.done.wait [#allocation10], 16  }
 0x329   :  { %832 = vsyncadd [#allocation10], 4294967280 }
 0x32a   :  { %694 = sfence }
 0x32b   :  { %695 = vsyncpa [#allocation9], 1 }
 0x32c   :  { %696 = vsyncpa [#allocation12], 1 }
 0x32d   :  { %697 = vsyncpa [#allocation10], 1 }

</bundles_post_ra>
